<compile_context>
chip_gen: v7x
topology: tpu7x:2x2x1
jax: 0.10.0
libtpu: 0.0.40
codegen_flags: <defaults>
</compile_context>

<pallas_src>
import functools

import jax
import jax.numpy as jnp
from jax import lax
from jax.experimental import pallas as pl
from jax.experimental.pallas import tpu as pltpu

GAMMA = 2.0                      # matches FocalLoss(gamma=2); squared explicitly below
_INV_LN2 = 1.4426950408889634    # log2(x) = ln(x) * 1/ln(2)


def _round_up(x: int, m: int) -> int:
    return (x + m - 1) // m * m


def _focal_loss_kernel(probs_ref, tgt_ref, out_ref, acc_ref, *, inv_n):
    # probs_ref : [TN, Cp] float VMEM  (probabilities; Pt lives at the target column)
    # tgt_ref   : [TN, 1]  int32 VMEM  (class index per row; -1 marks a padded row)
    # out_ref   : [1, 1]   f32 VMEM    (scalar mean focal loss)
    # acc_ref   : [1, 1]   f32 VMEM    (running sum, persists across grid steps)
    i = pl.program_id(0)

    @pl.when(i == 0)
    def _init():
        acc_ref[...] = jnp.zeros_like(acc_ref)

    probs = probs_ref[...].astype(jnp.float32)                     # [TN, Cp]
    tgt = tgt_ref[...]                                             # [TN, 1]
    tn, cp = probs.shape

    col_ids = lax.broadcasted_iota(jnp.int32, (tn, cp), 1)         # lane indices
    onehot = col_ids == jnp.broadcast_to(tgt, (tn, cp))            # [TN, Cp] bool

    # Gather Pt per row as a masked lane-reduce — no transcendental touches [TN, Cp].
    pt = jnp.sum(jnp.where(onehot, probs, jnp.float32(0.0)),
                 axis=-1, keepdims=True)                           # [TN, 1]

    # Padded rows (target == -1) never match the one-hot -> force Pt = 1 so
    # their contribution is exactly -(1-1)^2 * log2(1) == 0.
    valid = tgt >= 0
    pt = jnp.where(valid, pt, jnp.float32(1.0))

    d = jnp.float32(1.0) - pt
    focal = -(d * d) * (jnp.log(pt) * jnp.float32(_INV_LN2))       # [TN, 1]

    acc_ref[...] = acc_ref[...] + jnp.sum(focal, keepdims=True)

    @pl.when(i == pl.num_programs(0) - 1)
    def _finalize():
        # Divide by the GLOBAL N (not the per-block row count) only once, here.
        out_ref[...] = acc_ref[...] * jnp.float32(inv_n)


def focal_loss(probs: jax.Array, target: jax.Array) -> jax.Array:
    """probs: [N, C] float probabilities; target: [N] int class indices.
    Returns scalar mean focal loss (alphas=None, gamma=2, reduction='mean')."""
    n, c = probs.shape
    if not jnp.issubdtype(probs.dtype, jnp.floating):
        probs = probs.astype(jnp.float32)
    itemsize = jnp.dtype(probs.dtype).itemsize

    # Lane-dense class dimension.
    c_pad = _round_up(c, 128)

    # Row tile: big enough to amortize per-step overhead, capped so the
    # double-buffered input tile stays <= ~16 MiB (safe on v7x's smaller VMEM).
    cap = max(8, ((16 * 1024 * 1024) // (2 * c_pad * itemsize)) // 8 * 8)
    tn = min(512, cap, _round_up(n, 8))
    n_pad = _round_up(n, tn)

    probs_p = jnp.pad(probs, ((0, n_pad - n), (0, c_pad - c)))
    tgt = target.astype(jnp.int32).reshape(n, 1)
    tgt_p = jnp.pad(tgt, ((0, n_pad - n), (0, 0)), constant_values=-1)

    kernel = functools.partial(_focal_loss_kernel, inv_n=1.0 / n)

    cost = pl.CostEstimate(
        flops=3 * n * c,
        transcendentals=n,
        bytes_accessed=n_pad * c_pad * itemsize + n_pad * 4 + 4,
    )

    out = pl.pallas_call(
        kernel,
        out_shape=jax.ShapeDtypeStruct((1, 1), jnp.float32),
        grid_spec=pltpu.PrefetchScalarGridSpec(
            num_scalar_prefetch=0,
            grid=(n_pad // tn,),
            in_specs=[
                pl.BlockSpec((tn, c_pad), lambda i: (i, 0)),
                pl.BlockSpec((tn, 1), lambda i: (i, 0)),
            ],
            out_specs=pl.BlockSpec((1, 1), lambda i: (0, 0)),
            scratch_shapes=[pltpu.VMEM((1, 1), jnp.float32)],
        ),
        compiler_params=pltpu.CompilerParams(
            dimension_semantics=("arbitrary",),   # reduction axis with accumulator
        ),
        cost_estimate=cost,
    )(probs_p, tgt_p)
    return out[0, 0]


def focal_loss_ref(probs, target):
    # Pure-JAX reference matching the PyTorch loop (alphas=None, reduction='mean').
    pt = probs[jnp.arange(probs.shape[0]), target]
    loss = -((1.0 - pt) ** GAMMA) * jnp.log2(pt)
    return jnp.mean(loss)


if __name__ == "__main__":
    key = jax.random.PRNGKey(0)
    k_logits, k_tgt = jax.random.split(key)

    N, C = 8, 32  # small shapes consistent with a [batch, num_classes] input
    logits = jax.random.normal(k_logits, (N, C), dtype=jnp.float32)
    probs = jax.nn.softmax(logits, axis=-1)          # Pt must be in (0, 1)
    target = jax.random.randint(k_tgt, (N,), 0, C, dtype=jnp.int32)

    # TODO(synk): the PyTorch `alphas is not None` branch iterates range(len(target)-1)
    # (silently drops the last sample); only the alphas=None path is implemented here.

    out = focal_loss(probs, target)
    jax.block_until_ready(out)

    ref = focal_loss_ref(probs, target)
    assert jnp.allclose(out, ref, rtol=1e-5, atol=1e-5), (out, ref)

    print("KERNEL_OK")
</pallas_src>

<mosaic_0001>
module attributes {stable_mosaic.version = 11 : i64} {
  func.func @_focal_loss_kernel(%arg0: i32, %arg1: memref<8x128xf32, #tpu.memory_space<vmem>>, %arg2: memref<8x1xi32, #tpu.memory_space<vmem>>, %arg3: memref<1x1xf32, #tpu.memory_space<vmem>>, %arg4: memref<1x1xf32, #tpu.memory_space<vmem>>) attributes {dimension_semantics = [#tpu.dimension_semantics<arbitrary>], iteration_bounds = array<i64: 1>, scalar_prefetch = 0 : i64, scratch_operands = 1 : i64, tpu.core_type = #tpu.core_type<tc>, window_params = [{transform_indices = @transform_0, window_bounds = array<i64: 8, 128>}, {transform_indices = @transform_1, window_bounds = array<i64: 8, 1>}, {pipeline_mode = #tpu.pipeline_mode<synchronous>, transform_indices = @transform_2, window_bounds = array<i64: 1, 1>}]} {
    %c0_i32 = arith.constant 0 : i32
    %0 = arith.cmpi eq, %arg0, %c0_i32 : i32
    %1 = arith.extui %0 : i1 to i32
    %c0_i32_0 = arith.constant 0 : i32
    %2 = arith.cmpi ne, %1, %c0_i32_0 : i32
    scf.if %2 {
      %cst_17 = arith.constant 0.000000e+00 : f32
      %37 = vector.broadcast %cst_17 : f32 to vector<1x1xf32>
      %c0_18 = arith.constant 0 : index
      %c0_19 = arith.constant 0 : index
      %38 = vector.load %arg4[%c0_18, %c0_19] : memref<1x1xf32, #tpu.memory_space<vmem>>, vector<1x1xf32>
      tpu.vector_store %arg4[%c0_18, %c0_19], %37 {strides = array<i32>} : memref<1x1xf32, #tpu.memory_space<vmem>>, vector<1x1xf32>,
    } else {
    }
    %c0 = arith.constant 0 : index
    %c0_1 = arith.constant 0 : index
    %3 = vector.load %arg1[%c0, %c0_1] : memref<8x128xf32, #tpu.memory_space<vmem>>, vector<8x128xf32>
    %c0_2 = arith.constant 0 : index
    %c0_3 = arith.constant 0 : index
    %4 = vector.load %arg2[%c0_2, %c0_3] : memref<8x1xi32, #tpu.memory_space<vmem>>, vector<8x1xi32>
    %5 = tpu.iota {dimensions = array<i32: 1>} : vector<8x128xi32>
    %6 = vector.shape_cast %4 : vector<8x1xi32> to vector<8x1xi32>
    %7 = vector.broadcast %6 : vector<8x1xi32> to vector<8x128xi32>
    %8 = arith.cmpi eq, %5, %7 : vector<8x128xi32>
    %cst = arith.constant 0.000000e+00 : f32
    %9 = vector.broadcast %cst : f32 to vector<8x128xf32>
    %10 = arith.select %8, %3, %9 : vector<8x128xi1>, vector<8x128xf32>
    %cst_4 = arith.constant dense<0.000000e+00> : vector<8xf32>
    %11 = vector.multi_reduction <add>, %10, %cst_4 [1] : vector<8x128xf32> to vector<8xf32>
    %12 = vector.shape_cast %11 : vector<8xf32> to vector<8x1xf32>
    %c0_i32_5 = arith.constant 0 : i32
    %13 = vector.broadcast %c0_i32_5 : i32 to vector<8x1xi32>
    %14 = arith.cmpi sge, %4, %13 : vector<8x1xi32>
    %cst_6 = arith.constant 1.000000e+00 : f32
    %15 = vector.broadcast %cst_6 : f32 to vector<8x1xf32>
    %16 = arith.select %14, %12, %15 : vector<8x1xi1>, vector<8x1xf32>
    %cst_7 = arith.constant 1.000000e+00 : f32
    %17 = vector.broadcast %cst_7 : f32 to vector<8x1xf32>
    %18 = arith.subf %17, %16 : vector<8x1xf32>
    %19 = arith.mulf %18, %18 : vector<8x1xf32>
    %cst_8 = arith.constant 0.000000e+00 : f32
    %20 = vector.broadcast %cst_8 : f32 to vector<8x1xf32>
    %21 = arith.subf %20, %19 : vector<8x1xf32>
    %22 = math.log %16 : vector<8x1xf32>
    %cst_9 = arith.constant 1.44269502 : f32
    %23 = vector.broadcast %cst_9 : f32 to vector<8x1xf32>
    %24 = arith.mulf %22, %23 : vector<8x1xf32>
    %25 = arith.mulf %21, %24 : vector<8x1xf32>
    %c0_10 = arith.constant 0 : index
    %c0_11 = arith.constant 0 : index
    %26 = vector.load %arg4[%c0_10, %c0_11] : memref<1x1xf32, #tpu.memory_space<vmem>>, vector<1x1xf32>
    %27 = vector.shape_cast %25 : vector<8x1xf32> to vector<1x8x1xf32>
    %cst_12 = arith.constant dense<0.000000e+00> : vector<1xf32>
    %28 = vector.multi_reduction <add>, %27, %cst_12 [1, 2] : vector<1x8x1xf32> to vector<1xf32>
    %29 = vector.shape_cast %28 : vector<1xf32> to vector<1x1x1xf32>
    %30 = vector.extract %29[0, 0, 0] : f32 from vector<1x1x1xf32>
    %31 = vector.broadcast %30 : f32 to vector<1x1xf32>
    %32 = arith.addf %26, %31 : vector<1x1xf32>
    %c0_13 = arith.constant 0 : index
    %c0_14 = arith.constant 0 : index
    %33 = vector.load %arg4[%c0_13, %c0_14] : memref<1x1xf32, #tpu.memory_space<vmem>>, vector<1x1xf32>
    tpu.vector_store %arg4[%c0_13, %c0_14], %32 {strides = array<i32>} : memref<1x1xf32, #tpu.memory_space<vmem>>, vector<1x1xf32>,
    %c0_i32_15 = arith.constant 0 : i32
    %34 = arith.cmpi eq, %arg0, %c0_i32_15 : i32
    %35 = arith.extui %34 : i1 to i32
    %c0_i32_16 = arith.constant 0 : i32
    %36 = arith.cmpi ne, %35, %c0_i32_16 : i32
    scf.if %36 {
      %c0_17 = arith.constant 0 : index
      %c0_18 = arith.constant 0 : index
      %37 = vector.load %arg4[%c0_17, %c0_18] : memref<1x1xf32, #tpu.memory_space<vmem>>, vector<1x1xf32>
      %cst_19 = arith.constant 1.250000e-01 : f32
      %38 = vector.broadcast %cst_19 : f32 to vector<1x1xf32>
      %39 = arith.mulf %37, %38 : vector<1x1xf32>
      %c0_20 = arith.constant 0 : index
      %c0_21 = arith.constant 0 : index
      %40 = vector.load %arg3[%c0_20, %c0_21] : memref<1x1xf32, #tpu.memory_space<vmem>>, vector<1x1xf32>
      tpu.vector_store %arg3[%c0_20, %c0_21], %39 {strides = array<i32>} : memref<1x1xf32, #tpu.memory_space<vmem>>, vector<1x1xf32>,
    } else {
    }
    return
  }
  func.func @transform_0(%arg0: i32) -> (i32, i32) {
    %c0_i32 = arith.constant 0 : i32
    %c0_i32_0 = arith.constant 0 : i32
    return %arg0, %c0_i32 : i32, i32
  }
  func.func @transform_1(%arg0: i32) -> (i32, i32) {
    %c0_i32 = arith.constant 0 : i32
    %c0_i32_0 = arith.constant 0 : i32
    return %arg0, %c0_i32 : i32, i32
  }
  func.func @transform_2(%arg0: i32) -> (i32, i32) {
    %c0_i32 = arith.constant 0 : i32
    %c0_i32_0 = arith.constant 0 : i32
    %c0_i32_1 = arith.constant 0 : i32
    return %c0_i32, %c0_i32_0 : i32, i32
  }
}

</mosaic_0001>

<bundles_post_ra>
// kernel: tpu_custom_call.1
= control target key start
LH: loop header
LB: loop body
LE: loop exit
PB: predicated region body
PF: predicated region fallthrough
CT: control target
= control target key end

     0   :  { %s145_s0 = inlined_call_operand.vmem [shape: f32[8,128], index: 0, kind: input, shape index: {}]   ;;  %s146_s1 = inlined_call_operand.vmem [shape: s32[8,1], index: 1, kind: input, shape index: {}]   ;;  %s147_s2 = inlined_call_operand.hbm [shape: f32[1,1], index: 2, kind: output, shape index: {}]  }
   0x1   :  { %v19_v0 = vld [vmem:[%s146_s1] sm:$0xff] }
   0x2   :  { %7 = vsyncpa [#allocation4], 0  ;;  %v106_v1 = vmov 0   ;;  %v20_v2 = vlaneseq  ;;  %v18_v4 = vld [vmem:[%s145_s0] sm:$0xff]  ;;  %vm29_vm1 = vcmp.ge.s32.totalorder %v19_v0, 0  ;;  %vm39_vm2 = vcmask 7168  }
   0x3   :  { %79 = vset.pattern.permute.xlu0 %v106_v1  ;;  %vm16_vm3 = vcmask 0   ;;  %v107_v17 = vmov 0.0   ;;  %s108_s1 = smov [#allocation3]  }
   0x4   :  { %23 = vperm.xlu0 %79, %v19_v0   ;;  %v21_v3 = vand.u32 127, %v20_v2  ;;  %17 = vst.msk [vmem:[#allocation2] sm:$0x1] %vm16_vm3, %v107_v17  ;;  %s66_s13 = sshll.u32 %s108_s1, 4  ;;  %s67_s13 = int_to_ptr.vmem [resolvable:$true] %s66_s13 }
   0x5   :  { %s82_s14 = scalar_lea.vmem %s67_s13, 16  ;;  %s86_s15 = scalar_lea.vmem %s67_s13, 32 }
   0x6   :  { %p83_p0 = scmp.ne.s32.totalorder %s67_s13, %s82_s14  ;;  %p87_p1 = scmp.lt.s32.totalorder %s67_s13, %s67_s13 }
   0x7   :  { %p88_p2 = scmp.lt.s32.totalorder %s86_s15, %s82_s14 }
   0x9   :  { %p89_p3 = por %p88_p2, %p87_p1 }
   0xb   :  { %v38_v25 = vld [vmem:[#allocation2] sm:$0x1]  ;;  %p90_p4 = pnand %p89_p3, %p83_p0 }
  0x83   :  { %v24_v5 = vpop.permute.xlu0 %23 }
  0x84   :  { %vm25_vm0 = vcmp.eq.s32.totalorder %v21_v3, %v24_v5 }
  0x85   :  { %v26_v6 = vsel %vm25_vm0, %v18_v4, 0.0 }
  0x86   :  { %27 = vadd.xlane.f32.xlu0 %v26_v6 }
 0x113   :  { %v28_v7 = vpop.xlane.xlu0 %27 }
 0x114   :  { %v30_v8 = vsel %vm29_vm1, %v28_v7, 1.0 }
 0x115   :  { %80 = vlog2.f32 %v30_v8  ;;  %v31_v9 = vsub.f32 1.0, %v30_v8 }
 0x117   :  { %v32_v10 = vmul.f32 %v31_v9, %v31_v9 }
 0x119   :  { %v33_v13 = vsub.f32 0.0, %v32_v10 }
 0x11f   :  { %v81_v11 = vpop.eup %80 }
 0x120   :  { %v35_v12 = vmul.f32 0.6931472, %v81_v11 }
 0x122   :  { %v36_v14 = vmul.f32 1.442695, %v35_v12 }
 0x124   :  { %v37_v15 = vmul.f32 %v36_v14, %v33_v13 }
 0x126   :  { %v40_v16 = vsel %vm39_vm2, %v37_v15, 0.0 }
 0x127   :  { %41 = vadd.xlane.f32.xlu1 %v40_v16 }
 0x1b4   :  { %v42_v18 = vpop.xlane.xlu1 %41 }
 0x1b5   :  { %v43_v19 = vrot.slane %v42_v18, 4 }
 0x1b7   :  { %v44_v20 = vadd.f32 %v43_v19, %v42_v18 }
 0x1b9   :  { %v45_v21 = vrot.slane %v44_v20, 2 }
 0x1bb   :  { %v46_v22 = vadd.f32 %v45_v21, %v44_v20 }
 0x1bd   :  { %v47_v23 = vrot.slane %v46_v22, 1 }
 0x1bf   :  { %v48_v24 = vadd.f32 %v47_v23, %v46_v22 }
 0x1c1   :  { %74 = vpush %v48_v24 }
 0x1f2   :  { %s75_s0 = spop %74 }
 0x1f3   :  { %v50_v26 = vstv %s75_s0 }
 0x1f4   :  { %v51_v27 = vadd.f32 %v50_v26, %v38_v25 }
 0x1f6   :  { %53 = vst.msk [vmem:[#allocation2] sm:$0x1] %vm16_vm3, %v51_v27 }
 0x1fd   :  { %v57_v28 = vld [vmem:[#allocation2] sm:$0x1] }
 0x1fe   :  { %v58_v29 = vmul.f32 0.125, %v57_v28 }
 0x200   :  { %59 = vst.msk [vmem:[#allocation3] sm:$0x1] %vm16_vm3, %v58_v29 }
 0x201   :  { %93 = shalt.err (!%p90_p4)
}
 0x202   :  { %s94_s18 = scalar_lea.hbm %s147_s2, 16 }
 0x203   :  { %p95_p5 = scmp.ne.s32.totalorder %s147_s2, %s94_s18  ;;  %p98_p6 = scmp.lt.u32.totalorder %s94_s18, %s147_s2 }
 0x205   :  { %p100_p7 = pnand %p98_p6, %p95_p5 }
 0x207   :  { %103 = shalt.err (!%p100_p7)
}
 0x208   :  { %69 = dma.vmem_to_hbm [thread:$0]  %s67_s13, 16, %s147_s2, [#allocation4]  }
 0x209   :  { %104 = dma.done.wait [#allocation4], 16  }
 0x20a   :  { %105 = vsyncadd [#allocation4], 4294967280 }
 0x20b   :  { %73 = vsyncpa [#allocation4], 1 }

</bundles_post_ra>
